<compile_context>
chip_gen: v7x
topology: tpu7x:2x2x1
jax: 0.10.0
libtpu: 0.0.40
codegen_flags: <defaults>
</compile_context>

<pallas_src>
import functools

import jax
import jax.numpy as jnp
import numpy as np
from jax import lax
from jax.experimental import pallas as pl
from jax.experimental.pallas import tpu as pltpu


def _mh_attn_kernel(x_ref, wqkv_ref, wz_ref, bz_ref, out_ref, attn_ref,
                    *, num_heads, embed_size):
    """One grid step = one batch element. All heads fused inside."""
    H, D = num_heads, embed_size
    S = x_ref.shape[1]

    # Fused Q/K/V projection for all heads: (S, D) @ (D, 3*H*D) -> (S, 3*H*D).
    x = x_ref[0].astype(jnp.bfloat16)
    qkv = jnp.dot(x, wqkv_ref[...], preferred_element_type=jnp.float32)

    scale = 1.0 / (float(D) ** 0.5)      # == (D**-0.25) applied to both q and k
    inv_h = 1.0 / float(H)

    z_heads = []
    attn_sum = jnp.zeros((S, S), jnp.float32)
    for h in range(H):                    # H is small & static -> unrolled
        q_h = qkv[:, h * D:(h + 1) * D].astype(jnp.bfloat16)
        k_h = qkv[:, (H + h) * D:(H + h + 1) * D].astype(jnp.bfloat16)
        v_h = qkv[:, (2 * H + h) * D:(2 * H + h + 1) * D].astype(jnp.bfloat16)

        # q @ k^T as an NT contraction: no transpose materialized.
        s = lax.dot_general(q_h, k_h, (((1,), (1,)), ((), ())),
                            preferred_element_type=jnp.float32) * scale

        # Numerically-stable softmax over the last axis (torch dim=2).
        m = jnp.max(s, axis=-1, keepdims=True)
        e = jnp.exp(s - m)
        p = e * pl.reciprocal(jnp.sum(e, axis=-1, keepdims=True), approx=True)

        z_heads.append(jnp.dot(p.astype(jnp.bfloat16), v_h,
                               preferred_element_type=jnp.float32))
        attn_sum = attn_sum + p

    # cat(heads) @ Wz.T  ==  z_all (S, H*D) @ wz_t (H*D, D), single matmul.
    z_all = jnp.concatenate(z_heads, axis=-1).astype(jnp.bfloat16)
    zo = jnp.dot(z_all, wz_ref[...], preferred_element_type=jnp.float32)

    out_ref[0] = zo + bz_ref[...]         # bias (1, D) broadcasts over (S, D)
    attn_ref[0] = attn_sum * inv_h        # mean over heads


def mh_self_attention(x, wq, wk, wv, wz_weight, bz):
    """
    x         : (B, S, D)   float32
    wq/wk/wv  : (H, D, D)   per-head nn.Linear weights (out_features, in_features)
    wz_weight : (D, H*D)    Wz = nn.Linear(H*D, D) weight (out, in)
    bz        : (D,)        Wz bias
    returns (out, attn_mean) with shapes (B, S, D), (B, S, S)
    """
    B, S, D = x.shape
    H = wq.shape[0]

    # --- one-time layout plumbing (outside the kernel) ------------------------
    # Stack & pre-transpose per-head Linear weights so the kernel does
    # x @ W directly:  wqkv[:, h*D:(h+1)*D] == Wq_h.T, etc.
    def stack_t(w):  # (H, Dout, Din) -> (Din, H*Dout)
        return jnp.transpose(w, (2, 0, 1)).reshape(D, H * D)

    wqkv = jnp.concatenate([stack_t(wq), stack_t(wk), stack_t(wv)], axis=1)
    wqkv = wqkv.astype(jnp.bfloat16)                 # (D, 3*H*D)
    wz_t = wz_weight.T.astype(jnp.bfloat16)          # (H*D, D)
    bz2 = bz.reshape(1, D).astype(jnp.float32)       # (1, D)

    kernel = functools.partial(_mh_attn_kernel, num_heads=H, embed_size=D)

    out_shapes = (
        jax.ShapeDtypeStruct((B, S, D), jnp.float32),
        jax.ShapeDtypeStruct((B, S, S), jnp.float32),
    )

    grid_spec = pltpu.PrefetchScalarGridSpec(
        num_scalar_prefetch=0,
        grid=(B,),
        in_specs=[
            pl.BlockSpec((1, S, D), lambda b: (b, 0, 0)),        # x[b]
            pl.BlockSpec((D, 3 * H * D), lambda b: (0, 0)),      # fused QKV weights
            pl.BlockSpec((H * D, D), lambda b: (0, 0)),          # Wz^T
            pl.BlockSpec((1, D), lambda b: (0, 0)),              # Wz bias
        ],
        out_specs=[
            pl.BlockSpec((1, S, D), lambda b: (b, 0, 0)),
            pl.BlockSpec((1, S, S), lambda b: (b, 0, 0)),
        ],
    )

    return pl.pallas_call(
        kernel,
        out_shape=out_shapes,
        grid_spec=grid_spec,
        compiler_params=pltpu.CompilerParams(
            dimension_semantics=("parallel",)),
    )(x, wqkv, wz_t, bz2)


def _reference(x, wq, wk, wv, wz_weight, bz):
    """Pure-JAX f32 reference mirroring the PyTorch forward."""
    B, S, D = x.shape
    H = wq.shape[0]
    scale = float(D) ** 0.25
    outs = []
    attn_sum = jnp.zeros((B, S, S), jnp.float32)
    for h in range(H):
        q = x @ wq[h].T
        k = x @ wk[h].T
        v = x @ wv[h].T
        s = (q / scale) @ jnp.swapaxes(k / scale, 1, 2)
        p = jax.nn.softmax(s, axis=2)
        outs.append(p @ v)
        attn_sum = attn_sum + p
    z_cat = jnp.concatenate(outs, axis=-1)               # (B, S, H*D)
    out = z_cat @ wz_weight.T + bz
    return out, attn_sum / H


if __name__ == "__main__":
    # Small deterministic config consistent with the module:
    # batch=2, seq=8, input_size(=embed_size)=32, num_attn_heads=4
    B, S, D, H = 2, 8, 32, 4

    key = jax.random.PRNGKey(0)
    kx, kq, kk, kv, kz, kb = jax.random.split(key, 6)

    x = jax.random.normal(kx, (B, S, D), dtype=jnp.float32)
    wq = jax.random.normal(kq, (H, D, D), dtype=jnp.float32) * 0.1
    wk = jax.random.normal(kk, (H, D, D), dtype=jnp.float32) * 0.1
    wv = jax.random.normal(kv, (H, D, D), dtype=jnp.float32) * 0.1
    wz_weight = jax.random.normal(kz, (D, H * D), dtype=jnp.float32) * 0.1
    bz = jax.random.normal(kb, (D,), dtype=jnp.float32) * 0.1

    out, attn = mh_self_attention(x, wq, wk, wv, wz_weight, bz)
    out = jax.block_until_ready(out)
    attn = jax.block_until_ready(attn)

    ref_out, ref_attn = _reference(x, wq, wk, wv, wz_weight, bz)
    # Tolerance reflects bf16 MXU operands (f32 accumulation) vs f32 reference.
    np.testing.assert_allclose(np.asarray(out), np.asarray(ref_out),
                               rtol=2e-2, atol=2e-2)
    np.testing.assert_allclose(np.asarray(attn), np.asarray(ref_attn),
                               rtol=2e-2, atol=2e-2)

    print("KERNEL_OK")
</pallas_src>

<mosaic_0001>
module attributes {stable_mosaic.version = 11 : i64} {
  func.func @_mh_attn_kernel(%arg0: i32, %arg1: memref<1x8x32xf32, #tpu.memory_space<vmem>>, %arg2: memref<32x384xbf16, #tpu.memory_space<vmem>>, %arg3: memref<128x32xbf16, #tpu.memory_space<vmem>>, %arg4: memref<1x32xf32, #tpu.memory_space<vmem>>, %arg5: memref<1x8x32xf32, #tpu.memory_space<vmem>>, %arg6: memref<1x8x8xf32, #tpu.memory_space<vmem>>) attributes {dimension_semantics = [#tpu.dimension_semantics<parallel>], iteration_bounds = array<i64: 2>, scalar_prefetch = 0 : i64, scratch_operands = 0 : i64, tpu.core_type = #tpu.core_type<tc>, window_params = [{transform_indices = @transform_0, window_bounds = array<i64: 1, 8, 32>}, {pipeline_mode = #tpu.pipeline_mode<synchronous>, transform_indices = @transform_1, window_bounds = array<i64: 32, 384>}, {pipeline_mode = #tpu.pipeline_mode<synchronous>, transform_indices = @transform_2, window_bounds = array<i64: 128, 32>}, {pipeline_mode = #tpu.pipeline_mode<synchronous>, transform_indices = @transform_3, window_bounds = array<i64: 1, 32>}, {transform_indices = @transform_4, window_bounds = array<i64: 1, 8, 32>}, {transform_indices = @transform_5, window_bounds = array<i64: 1, 8, 8>}]} {
    %c0 = arith.constant 0 : index
    %c0_0 = arith.constant 0 : index
    %c0_1 = arith.constant 0 : index
    %0 = vector.load %arg1[%c0, %c0_0, %c0_1] : memref<1x8x32xf32, #tpu.memory_space<vmem>>, vector<1x8x32xf32>
    %1 = vector.shape_cast %0 : vector<1x8x32xf32> to vector<8x32xf32>
    %2 = arith.truncf %1 : vector<8x32xf32> to vector<8x32xbf16>
    %c0_2 = arith.constant 0 : index
    %c0_3 = arith.constant 0 : index
    %3 = vector.load %arg2[%c0_2, %c0_3] : memref<32x384xbf16, #tpu.memory_space<vmem>>, vector<32x384xbf16>
    %cst = arith.constant dense<0.000000e+00> : vector<8x384xf32>
    %4 = tpu.matmul %2, %3, %cst {dimension_numbers = #tpu.dot_dimension_numbers<[1], [0], [0], [1], [0, 0, 1, 1], [], []>} : vector<8x32xbf16>, vector<32x384xbf16>, vector<8x384xf32> -> vector<8x384xf32>
    %cst_4 = arith.constant 0.000000e+00 : f32
    %5 = vector.broadcast %cst_4 : f32 to vector<8x8xf32>
    %6 = vector.extract_strided_slice %4 {offsets = [0, 0], sizes = [8, 32], strides = [1, 1]} : vector<8x384xf32> to vector<8x32xf32>
    %7 = arith.truncf %6 : vector<8x32xf32> to vector<8x32xbf16>
    %8 = vector.extract_strided_slice %4 {offsets = [0, 128], sizes = [8, 32], strides = [1, 1]} : vector<8x384xf32> to vector<8x32xf32>
    %9 = arith.truncf %8 : vector<8x32xf32> to vector<8x32xbf16>
    %10 = vector.extract_strided_slice %4 {offsets = [0, 256], sizes = [8, 32], strides = [1, 1]} : vector<8x384xf32> to vector<8x32xf32>
    %11 = arith.truncf %10 : vector<8x32xf32> to vector<8x32xbf16>
    %cst_5 = arith.constant dense<0.000000e+00> : vector<8x8xf32>
    %12 = tpu.matmul %7, %9, %cst_5 {dimension_numbers = #tpu.dot_dimension_numbers<[1], [1], [0], [0], [0, 0, 1, 0], [], []>} : vector<8x32xbf16>, vector<8x32xbf16>, vector<8x8xf32> -> vector<8x8xf32>
    %cst_6 = arith.constant 0.176776692 : f32
    %13 = vector.broadcast %cst_6 : f32 to vector<8x8xf32>
    %14 = arith.mulf %12, %13 : vector<8x8xf32>
    %cst_7 = arith.constant dense<0xFF800000> : vector<8xf32>
    %15 = vector.multi_reduction <maximumf>, %14, %cst_7 [1] : vector<8x8xf32> to vector<8xf32>
    %16 = vector.shape_cast %15 : vector<8xf32> to vector<8x1xf32>
    %17 = vector.broadcast %16 : vector<8x1xf32> to vector<8x8xf32>
    %18 = arith.subf %14, %17 : vector<8x8xf32>
    %19 = math.exp %18 : vector<8x8xf32>
    %cst_8 = arith.constant dense<0.000000e+00> : vector<8xf32>
    %20 = vector.multi_reduction <add>, %19, %cst_8 [1] : vector<8x8xf32> to vector<8xf32>
    %21 = vector.shape_cast %20 : vector<8xf32> to vector<8x1xf32>
    %22 = tpu.reciprocal %21 {approx = true} : vector<8x1xf32> -> vector<8x1xf32>
    %23 = vector.broadcast %22 : vector<8x1xf32> to vector<8x8xf32>
    %24 = arith.mulf %19, %23 : vector<8x8xf32>
    %25 = arith.truncf %24 : vector<8x8xf32> to vector<8x8xbf16>
    %cst_9 = arith.constant dense<0.000000e+00> : vector<8x32xf32>
    %26 = tpu.matmul %25, %11, %cst_9 {dimension_numbers = #tpu.dot_dimension_numbers<[1], [0], [0], [1], [0, 0, 1, 1], [], []>} : vector<8x8xbf16>, vector<8x32xbf16>, vector<8x32xf32> -> vector<8x32xf32>
    %27 = arith.addf %5, %24 : vector<8x8xf32>
    %28 = vector.extract_strided_slice %4 {offsets = [0, 32], sizes = [8, 32], strides = [1, 1]} : vector<8x384xf32> to vector<8x32xf32>
    %29 = arith.truncf %28 : vector<8x32xf32> to vector<8x32xbf16>
    %30 = vector.extract_strided_slice %4 {offsets = [0, 160], sizes = [8, 32], strides = [1, 1]} : vector<8x384xf32> to vector<8x32xf32>
    %31 = arith.truncf %30 : vector<8x32xf32> to vector<8x32xbf16>
    %32 = vector.extract_strided_slice %4 {offsets = [0, 288], sizes = [8, 32], strides = [1, 1]} : vector<8x384xf32> to vector<8x32xf32>
    %33 = arith.truncf %32 : vector<8x32xf32> to vector<8x32xbf16>
    %cst_10 = arith.constant dense<0.000000e+00> : vector<8x8xf32>
    %34 = tpu.matmul %29, %31, %cst_10 {dimension_numbers = #tpu.dot_dimension_numbers<[1], [1], [0], [0], [0, 0, 1, 0], [], []>} : vector<8x32xbf16>, vector<8x32xbf16>, vector<8x8xf32> -> vector<8x8xf32>
    %cst_11 = arith.constant 0.176776692 : f32
    %35 = vector.broadcast %cst_11 : f32 to vector<8x8xf32>
    %36 = arith.mulf %34, %35 : vector<8x8xf32>
    %cst_12 = arith.constant dense<0xFF800000> : vector<8xf32>
    %37 = vector.multi_reduction <maximumf>, %36, %cst_12 [1] : vector<8x8xf32> to vector<8xf32>
    %38 = vector.shape_cast %37 : vector<8xf32> to vector<8x1xf32>
    %39 = vector.broadcast %38 : vector<8x1xf32> to vector<8x8xf32>
    %40 = arith.subf %36, %39 : vector<8x8xf32>
    %41 = math.exp %40 : vector<8x8xf32>
    %cst_13 = arith.constant dense<0.000000e+00> : vector<8xf32>
    %42 = vector.multi_reduction <add>, %41, %cst_13 [1] : vector<8x8xf32> to vector<8xf32>
    %43 = vector.shape_cast %42 : vector<8xf32> to vector<8x1xf32>
    %44 = tpu.reciprocal %43 {approx = true} : vector<8x1xf32> -> vector<8x1xf32>
    %45 = vector.broadcast %44 : vector<8x1xf32> to vector<8x8xf32>
    %46 = arith.mulf %41, %45 : vector<8x8xf32>
    %47 = arith.truncf %46 : vector<8x8xf32> to vector<8x8xbf16>
    %cst_14 = arith.constant dense<0.000000e+00> : vector<8x32xf32>
    %48 = tpu.matmul %47, %33, %cst_14 {dimension_numbers = #tpu.dot_dimension_numbers<[1], [0], [0], [1], [0, 0, 1, 1], [], []>} : vector<8x8xbf16>, vector<8x32xbf16>, vector<8x32xf32> -> vector<8x32xf32>
    %49 = arith.addf %27, %46 : vector<8x8xf32>
    %50 = vector.extract_strided_slice %4 {offsets = [0, 64], sizes = [8, 32], strides = [1, 1]} : vector<8x384xf32> to vector<8x32xf32>
    %51 = arith.truncf %50 : vector<8x32xf32> to vector<8x32xbf16>
    %52 = vector.extract_strided_slice %4 {offsets = [0, 192], sizes = [8, 32], strides = [1, 1]} : vector<8x384xf32> to vector<8x32xf32>
    %53 = arith.truncf %52 : vector<8x32xf32> to vector<8x32xbf16>
    %54 = vector.extract_strided_slice %4 {offsets = [0, 320], sizes = [8, 32], strides = [1, 1]} : vector<8x384xf32> to vector<8x32xf32>
    %55 = arith.truncf %54 : vector<8x32xf32> to vector<8x32xbf16>
    %cst_15 = arith.constant dense<0.000000e+00> : vector<8x8xf32>
    %56 = tpu.matmul %51, %53, %cst_15 {dimension_numbers = #tpu.dot_dimension_numbers<[1], [1], [0], [0], [0, 0, 1, 0], [], []>} : vector<8x32xbf16>, vector<8x32xbf16>, vector<8x8xf32> -> vector<8x8xf32>
    %cst_16 = arith.constant 0.176776692 : f32
    %57 = vector.broadcast %cst_16 : f32 to vector<8x8xf32>
    %58 = arith.mulf %56, %57 : vector<8x8xf32>
    %cst_17 = arith.constant dense<0xFF800000> : vector<8xf32>
    %59 = vector.multi_reduction <maximumf>, %58, %cst_17 [1] : vector<8x8xf32> to vector<8xf32>
    %60 = vector.shape_cast %59 : vector<8xf32> to vector<8x1xf32>
    %61 = vector.broadcast %60 : vector<8x1xf32> to vector<8x8xf32>
    %62 = arith.subf %58, %61 : vector<8x8xf32>
    %63 = math.exp %62 : vector<8x8xf32>
    %cst_18 = arith.constant dense<0.000000e+00> : vector<8xf32>
    %64 = vector.multi_reduction <add>, %63, %cst_18 [1] : vector<8x8xf32> to vector<8xf32>
    %65 = vector.shape_cast %64 : vector<8xf32> to vector<8x1xf32>
    %66 = tpu.reciprocal %65 {approx = true} : vector<8x1xf32> -> vector<8x1xf32>
    %67 = vector.broadcast %66 : vector<8x1xf32> to vector<8x8xf32>
    %68 = arith.mulf %63, %67 : vector<8x8xf32>
    %69 = arith.truncf %68 : vector<8x8xf32> to vector<8x8xbf16>
    %cst_19 = arith.constant dense<0.000000e+00> : vector<8x32xf32>
    %70 = tpu.matmul %69, %55, %cst_19 {dimension_numbers = #tpu.dot_dimension_numbers<[1], [0], [0], [1], [0, 0, 1, 1], [], []>} : vector<8x8xbf16>, vector<8x32xbf16>, vector<8x32xf32> -> vector<8x32xf32>
    %71 = arith.addf %49, %68 : vector<8x8xf32>
    %72 = vector.extract_strided_slice %4 {offsets = [0, 96], sizes = [8, 32], strides = [1, 1]} : vector<8x384xf32> to vector<8x32xf32>
    %73 = arith.truncf %72 : vector<8x32xf32> to vector<8x32xbf16>
    %74 = vector.extract_strided_slice %4 {offsets = [0, 224], sizes = [8, 32], strides = [1, 1]} : vector<8x384xf32> to vector<8x32xf32>
    %75 = arith.truncf %74 : vector<8x32xf32> to vector<8x32xbf16>
    %76 = vector.extract_strided_slice %4 {offsets = [0, 352], sizes = [8, 32], strides = [1, 1]} : vector<8x384xf32> to vector<8x32xf32>
    %77 = arith.truncf %76 : vector<8x32xf32> to vector<8x32xbf16>
    %cst_20 = arith.constant dense<0.000000e+00> : vector<8x8xf32>
    %78 = tpu.matmul %73, %75, %cst_20 {dimension_numbers = #tpu.dot_dimension_numbers<[1], [1], [0], [0], [0, 0, 1, 0], [], []>} : vector<8x32xbf16>, vector<8x32xbf16>, vector<8x8xf32> -> vector<8x8xf32>
    %cst_21 = arith.constant 0.176776692 : f32
    %79 = vector.broadcast %cst_21 : f32 to vector<8x8xf32>
    %80 = arith.mulf %78, %79 : vector<8x8xf32>
    %cst_22 = arith.constant dense<0xFF800000> : vector<8xf32>
    %81 = vector.multi_reduction <maximumf>, %80, %cst_22 [1] : vector<8x8xf32> to vector<8xf32>
    %82 = vector.shape_cast %81 : vector<8xf32> to vector<8x1xf32>
    %83 = vector.broadcast %82 : vector<8x1xf32> to vector<8x8xf32>
    %84 = arith.subf %80, %83 : vector<8x8xf32>
    %85 = math.exp %84 : vector<8x8xf32>
    %cst_23 = arith.constant dense<0.000000e+00> : vector<8xf32>
    %86 = vector.multi_reduction <add>, %85, %cst_23 [1] : vector<8x8xf32> to vector<8xf32>
    %87 = vector.shape_cast %86 : vector<8xf32> to vector<8x1xf32>
    %88 = tpu.reciprocal %87 {approx = true} : vector<8x1xf32> -> vector<8x1xf32>
    %89 = vector.broadcast %88 : vector<8x1xf32> to vector<8x8xf32>
    %90 = arith.mulf %85, %89 : vector<8x8xf32>
    %91 = arith.truncf %90 : vector<8x8xf32> to vector<8x8xbf16>
    %cst_24 = arith.constant dense<0.000000e+00> : vector<8x32xf32>
    %92 = tpu.matmul %91, %77, %cst_24 {dimension_numbers = #tpu.dot_dimension_numbers<[1], [0], [0], [1], [0, 0, 1, 1], [], []>} : vector<8x8xbf16>, vector<8x32xbf16>, vector<8x32xf32> -> vector<8x32xf32>
    %93 = arith.addf %71, %90 : vector<8x8xf32>
    %94 = tpu.concatenate %26, %48, %70, %92 in 1 : vector<8x32xf32>, vector<8x32xf32>, vector<8x32xf32>, vector<8x32xf32> -> vector<8x128xf32>
    %95 = arith.truncf %94 : vector<8x128xf32> to vector<8x128xbf16>
    %c0_25 = arith.constant 0 : index
    %c0_26 = arith.constant 0 : index
    %96 = vector.load %arg3[%c0_25, %c0_26] : memref<128x32xbf16, #tpu.memory_space<vmem>>, vector<128x32xbf16>
    %cst_27 = arith.constant dense<0.000000e+00> : vector<8x32xf32>
    %97 = tpu.matmul %95, %96, %cst_27 {dimension_numbers = #tpu.dot_dimension_numbers<[1], [0], [0], [1], [0, 0, 1, 1], [], []>} : vector<8x128xbf16>, vector<128x32xbf16>, vector<8x32xf32> -> vector<8x32xf32>
    %c0_28 = arith.constant 0 : index
    %c0_29 = arith.constant 0 : index
    %98 = vector.load %arg4[%c0_28, %c0_29] : memref<1x32xf32, #tpu.memory_space<vmem>>, vector<1x32xf32>
    %99 = vector.broadcast %98 : vector<1x32xf32> to vector<8x32xf32>
    %100 = arith.addf %97, %99 : vector<8x32xf32>
    %c0_30 = arith.constant 0 : index
    %c0_31 = arith.constant 0 : index
    %c0_32 = arith.constant 0 : index
    %101 = vector.load %arg5[%c0_30, %c0_31, %c0_32] : memref<1x8x32xf32, #tpu.memory_space<vmem>>, vector<1x8x32xf32>
    %102 = vector.shape_cast %101 : vector<1x8x32xf32> to vector<8x32xf32>
    %103 = vector.shape_cast %100 : vector<8x32xf32> to vector<1x8x32xf32>
    tpu.vector_store %arg5[%c0_30, %c0_31, %c0_32], %103 {strides = array<i32>} : memref<1x8x32xf32, #tpu.memory_space<vmem>>, vector<1x8x32xf32>,
    %cst_33 = arith.constant 2.500000e-01 : f32
    %104 = vector.broadcast %cst_33 : f32 to vector<8x8xf32>
    %105 = arith.mulf %93, %104 : vector<8x8xf32>
    %c0_34 = arith.constant 0 : index
    %c0_35 = arith.constant 0 : index
    %c0_36 = arith.constant 0 : index
    %106 = vector.load %arg6[%c0_34, %c0_35, %c0_36] : memref<1x8x8xf32, #tpu.memory_space<vmem>>, vector<1x8x8xf32>
    %107 = vector.shape_cast %106 : vector<1x8x8xf32> to vector<8x8xf32>
    %108 = vector.shape_cast %105 : vector<8x8xf32> to vector<1x8x8xf32>
    tpu.vector_store %arg6[%c0_34, %c0_35, %c0_36], %108 {strides = array<i32>} : memref<1x8x8xf32, #tpu.memory_space<vmem>>, vector<1x8x8xf32>,
    return
  }
  func.func @transform_0(%arg0: i32) -> (i32, i32, i32) {
    %c0_i32 = arith.constant 0 : i32
    %c0_i32_0 = arith.constant 0 : i32
    %c0_i32_1 = arith.constant 0 : i32
    return %arg0, %c0_i32, %c0_i32_0 : i32, i32, i32
  }
  func.func @transform_1(%arg0: i32) -> (i32, i32) {
    %c0_i32 = arith.constant 0 : i32
    %c0_i32_0 = arith.constant 0 : i32
    %c0_i32_1 = arith.constant 0 : i32
    return %c0_i32, %c0_i32_0 : i32, i32
  }
  func.func @transform_2(%arg0: i32) -> (i32, i32) {
    %c0_i32 = arith.constant 0 : i32
    %c0_i32_0 = arith.constant 0 : i32
    %c0_i32_1 = arith.constant 0 : i32
    return %c0_i32, %c0_i32_0 : i32, i32
  }
  func.func @transform_3(%arg0: i32) -> (i32, i32) {
    %c0_i32 = arith.constant 0 : i32
    %c0_i32_0 = arith.constant 0 : i32
    %c0_i32_1 = arith.constant 0 : i32
    return %c0_i32, %c0_i32_0 : i32, i32
  }
  func.func @transform_4(%arg0: i32) -> (i32, i32, i32) {
    %c0_i32 = arith.constant 0 : i32
    %c0_i32_0 = arith.constant 0 : i32
    %c0_i32_1 = arith.constant 0 : i32
    return %arg0, %c0_i32, %c0_i32_0 : i32, i32, i32
  }
  func.func @transform_5(%arg0: i32) -> (i32, i32, i32) {
    %c0_i32 = arith.constant 0 : i32
    %c0_i32_0 = arith.constant 0 : i32
    %c0_i32_1 = arith.constant 0 : i32
    return %arg0, %c0_i32, %c0_i32_0 : i32, i32, i32
  }
}

</mosaic_0001>

<bundles_post_ra>
// kernel: tpu_custom_call.1
= control target key start
LH: loop header
LB: loop body
LE: loop exit
PB: predicated region body
PF: predicated region fallthrough
CT: control target
= control target key end

     0   :  { %11 = vsyncpa [#allocation3], 0  ;;  %s1691_s0 = inlined_call_operand.vmem [shape: f32[2,8,32], index: 0, kind: input, shape index: {}]   ;;  %s1692_s1 = inlined_call_operand.vmem [shape: bf16[32,384], index: 1, kind: input, shape index: {}]   ;;  %s1693_s2 = inlined_call_operand.vmem [shape: bf16[128,32], index: 2, kind: input, shape index: {}]   ;;  %s1694_s3 = inlined_call_operand.vmem [shape: f32[1,32], index: 3, kind: input, shape index: {}]   ;;  %s1695_s4 = inlined_call_operand.hbm [shape: f32[2,8,32], index: 4, kind: output, shape index: {0}]   ;;  %s1696_s5 = inlined_call_operand.hbm [shape: f32[2,8,8], index: 5, kind: output, shape index: {1}]  }
   0x1   :  { %13 = vsyncpa [#allocation3 + $0x1], 0 }
   0x2   :  { %14 = vsyncpa [#allocation5], 0 }
   0x3   :  { %16 = vsyncpa [#allocation5 + $0x1], 0  ;;  %s1422_s18 = smov 0   ;;  %s1424_s19 = smov 0  }
   0x4   :  { %s1426_s20 = smov 0   ;;  %s1428_s21 = smov 0  }
   0x5 LB: > { %s1443_s22 = sadd.s32 4294967295, %s1382_s21   ;;  %s1064_s23 = sadd.s32 4294967294, %s1382_s21   ;;  %s1382_s21 = sphi %s1428_s21, %s1702_s21   ;;  %s1378_s20 = sphi %s1426_s20, %s1701_s20   ;;  %s1374_s19 = sphi %s1424_s19, %s1700_s19   ;;  %s1370_s18 = sphi %s1422_s18, %s1699_s18  }
   0x6   : > { %s1447_s24 = sadd.s32 1, %s1382_s21   ;;  %s118_s25 = sadd.s32 1, %s1378_s20 }
   0x7   : > { %s115_s26 = ssub.s32 %s1382_s21, %s1447_s24  ;;  %p128_p0 = scmp.ne.s32.totalorder %s1378_s20, %s1374_s19 }
   0x8   : > { %p116_p1 = scmp.eq.s32.totalorder %s115_s26, 0  ;;  %p129_p2 = scmp.eq.s32.totalorder %s1443_s22, 1 }
   0x9   : > { %p134_p3 = scmp.ne.s32.totalorder %s1374_s19, %s1370_s18  ;;  %p135_p4 = scmp.eq.s32.totalorder %s1064_s23, 1 }
   0xa   : > { %s1458_s27 = scalar_select %p116_p1, %s1378_s20, %s118_s25  }
   0xb   : > { %p1460_p5 = por %p129_p2, %p128_p0  ;;  %p1464_p6 = por %p135_p4, %p134_p3 }
   0xc   : > { %p1067_p7 = scmp.ge.s32.totalorder %s1382_s21, 1  ;;  %p195_p8 = scmp.lt.s32.totalorder %s1382_s21, 3 }
   0xe   : > { %p196_p9 = pnand %p1067_p7, %p195_p8 }
   0xf   : > { %v1256_v0 = vld [vmem:[%s1692_s1 + $0x4] ss:$12 sps:$4 sm:$0xff] (!%p196_p9)   ;;  %p227_p10 = scmp.lt.s32.totalorder (!%p196_p9), %s1443_s22, 1  ;;  %v1258_v1 = vld [vmem:[%s1692_s1] ss:$12 sps:$4 sm:$0xff] (!%p196_p9)   ;;  %v1384_v2 = vmov (!%p196_p9), 0  }
  0x10   : > { %199 = sbr.rel (%p196_p9) target bundleno = 1473 (0x5c1), region = 36  ;;  %310 = vmatprep.mubr.bf16.mxu1 (!%p196_p9), %v1384_v2  ;;  %278 = vmatprep.subr.bf16.mxu1 (!%p196_p9), %v1256_v0  ;;  %v1259_v3 = vld [vmem:[%s1692_s1 + $0x1c] ss:$12 sps:$4 sm:$0xff] (!%p196_p9)   ;;  %v1385_v4 = vmov (!%p196_p9), 0.0   ;;  %v1261_v5 = vld [vmem:[%s1692_s1 + $0x18] ss:$12 sps:$4 sm:$0xff] (!%p196_p9)  }
  0x11   : > { %1150 = vmatprep.subr.bf16.mxu0 (!%p196_p9), %v1385_v4  ;;  %279 = vmatpush1.bf16.msra.mxu1 (!%p196_p9), %v1258_v1  ;;  %v1262_v6 = vld [vmem:[%s1692_s1 + $0x8] ss:$12 sps:$4 sm:$0xff] (!%p196_p9)   ;;  %vm274_vm0 = vcmask (!%p196_p9), 261120   ;;  %v1263_v9 = vld [vmem:[%s1692_s1 + $0x20] ss:$12 sps:$4 sm:$0xff] (!%p196_p9)   ;;  %vm1386_vm1 = vmmov (!%p196_p9), 0  }
  0x12   : > { %280 = vmatprep.subr.bf16.mxu1 (!%p196_p9), %v1259_v3  ;;  %1152 = vmatprep.mubr.msk.bf16.mxu0 (!%p196_p9), %vm1386_vm1, %v1385_v4  ;;  %s1387_s6 = smov (!%p196_p9), 64   ;;  %s1388_s7 = smov (!%p196_p9), 96   ;;  %vm425_vm2 = vcmask (!%p196_p9), 1043456   ;;  %vm409_vm3 = vcmask (!%p196_p9), 64512   ;;  %vm822_vm4 = vcmask (!%p196_p9), 523264   ;;  %vm824_vm5 = vcmask (!%p196_p9), 785408  }
  0x13   : > { %s1389_s8 = smov (!%p196_p9), 32   ;;  %s1563_s9 = sand.u32 (!%p196_p9), 1, %s1374_s19  }
  0x14   : > { %s1068_s10 = sshll.u32 (!%p196_p9), %s1563_s9, 3  ;;  %s947_s26 = scalar_lea.sflag (!%p196_p9), [#allocation5], %s1563_s9 }
  0x15   : > { %281 = vmatpush1.bf16.msra.mxu1 (!%p196_p9), %v1261_v5  ;;  %s1390_s12 = smov (!%p196_p9), [#allocation4]  }
  0x16   : > { %1130 = vmatprep.subr.bf16.mxu1 (!%p196_p9), %v1385_v4  ;;  %s1292_s13 = sshll.u32 (!%p196_p9), %s1390_s12, 4  ;;  %s1293_s13 = int_to_ptr.vmem [resolvable:$false] %s1292_s13 }
  0x17   : > { %s228_s11 = scalar_select %p227_p10, %s1443_s22, 1 }
  0x19   : > { %s1070_s14 = sshll.u32 %s228_s11, 3  ;;  %s1571_s11 = scalar_lea.vmem [#allocation4], %s1068_s10 }
  0x1a   : > { %s230_s17 = scalar_lea.vmem %s1691_s0, %s1070_s14  ;;  %s973_s25 = sshll.u32 %s1571_s11, 4  ;;  %s974_s25 = int_to_ptr.vmem [resolvable:$true] %s973_s25 }
  0x1b   : > { %v232_v7 = vld [vmem:[%s230_s17] sm:$0xff]  ;;  %s1288_s30 = scalar_lea.vmem %s974_s25, 128  ;;  %s1294_s14 = scalar_lea.vmem %s1293_s13, 256 }
  0x1c   : > { %v233_v8 = vpack.c.bf16 %v232_v7, %v232_v7  ;;  %p1289_p11 = scmp.ne.s32.totalorder %s974_s25, %s1288_s30  ;;  %p1295_p0 = scmp.lt.s32.totalorder %s974_s25, %s1293_s13 }
  0x1d   : > { %p1296_p1 = scmp.lt.s32.totalorder %s1294_s14, %s1288_s30 }
  0x1e   : > { %1077 = vmatmul.mubr.msk.bf16.vlgmr.msra.gmra.mrb[0].mxu1 %vm274_vm0, %v233_v8  ;;  %p1290_p12 = pnand %p1289_p11, %p1460_p5 }
  0x1f   : > { %1131 = vmatpush3.bf16.msra.mxu1 %v1262_v6  ;;  %1134 = vmatprep.mubr.msk.bf16.mxu1 %vm1386_vm1, %v1385_v4  ;;  %p1297_p2 = por %p1296_p1, %p1295_p0 }
  0x20   : > { %1132 = vmatprep.subr.bf16.mxu1 %v1385_v4  ;;  %p1291_p13 = pneg %p1290_p12 }
  0x22   : > { %p1298_p3 = pnand %p1297_p2, %p1291_p13 }
  0x23   : > { %1133 = vmatpush3.bf16.msra.mxu1 %v1263_v9 }
  0x24   : > { %1138 = vmatprep.subr.bf16.mxu1 %v1385_v4 }
  0x26   : > { %1135 = vmatmul.mubr.msk.bf16.vlgmr.msra.gmra.mrb[4].mxu1 %vm274_vm0, %v233_v8 }
  0x27   : > { %1140 = vmatprep.mubr.msk.bf16.mxu1 %vm1386_vm1, %v1385_v4 }
  0xf1   : > { %v312_v10 = vpop.f32.mrb[0].mxu1 }
  0xf2   : > { %v314_v11 = vpop.f32.mrb[1].mxu1  ;;  %v359_v16 = vpack.c.bf16 %v312_v10, %v312_v10 }
  0xf3   : > { %v360_v12 = vpack.c.bf16 %v314_v11, %v314_v11  ;;  %v316_v13 = vpop.f32.mrb[2].mxu1 }
  0xf4   : > { %v317_v14 = vpop.f32.mrb[3].mxu1 }
  0xf5   : > { %587 = vrot.lane.b32.xlu1 %v360_v12, %s1387_s6  ;;  %474 = vrot.lane.b32.xlu0 %v360_v12, %s1388_s7  ;;  %v366_v15 = vsel %vm274_vm0, %v360_v12, 0 }
  0xf6   : > { %1139 = vmatpush3.bf16.xpose.msra.mxu1 %v366_v15 }
  0xf7   : > { %1144 = vmatprep.subr.bf16.mxu1 %v1385_v4 }
  0xf9   : > { %585 = vrot.lane.b32.xlu1 %v359_v16, %s1387_s6  ;;  %471 = vrot.lane.b32.xlu0 %v359_v16, %s1388_s7  ;;  %v353_v17 = vpop.f32.mrb[4].mxu1 }
  0xfa   : > { %v1136_v18 = vpop.f32.mrb[5].mxu1  ;;  %v1516_v21 = vpack.c.bf16 %v353_v17, %v353_v17 }
  0xfb   : > { %v356_v19 = vpop.f32.mrb[6].mxu1 }
  0xfc   : > { %v1137_v20 = vpop.f32.mrb[7].mxu1  ;;  %v427_v22 = vsel %vm425_vm2, %v1516_v21, 0 }
  0xfd   : > { %697 = vrot.lane.b32.xlu1 %v359_v16, %s1389_s8  ;;  %699 = vrot.lane.b32.xlu0 %v360_v12, %s1389_s8 }
  0xfe   : > { %1141 = vmatmul.mubr.msk.bf16.vlgmr.msra.gmra.mrb[8].mxu1 %vm274_vm0, %v359_v16 }
  0xff   : > { %1146 = vmatprep.mubr.msk.bf16.mxu1 %vm1386_vm1, %v1385_v4  ;;  %1145 = vmatpush3.bf16.msra.mxu1 %v427_v22 }
 0x100   : > { %1156 = vmatprep.subr.bf16.mxu1 %v1385_v4 }
 0x167   : > { %v475_v23 = vpop.permute.xlu0 %474  ;;  %v588_v25 = vpop.permute.xlu1 %587 }
 0x168   : > { %v480_v24 = vsel %vm274_vm0, %v475_v23, 0  ;;  %v593_v27 = vsel %vm274_vm0, %v588_v25, 0 }
 0x169   : > { %1151 = vmatpush3.bf16.xpose.msra.mxu0 %v480_v24 }
 0x16a   : > { %1162 = vmatprep.subr.bf16.mxu0 %v1385_v4 }
 0x16b   : > { %v472_v26 = vpop.permute.xlu0 %471  ;;  %v586_v29 = vpop.permute.xlu1 %585 }
 0x16f   : > { %v700_v28 = vpop.permute.xlu0 %699  ;;  %v698_v31 = vpop.permute.xlu1 %697 }
 0x170   : > { %1153 = vmatmul.mubr.msk.bf16.vlgmr.msra.gmra.mrb[0].mxu0 %vm274_vm0, %v472_v26  ;;  %v705_v30 = vsel %vm274_vm0, %v700_v28, 0 }
 0x171   : > { %1163 = vmatpush3.bf16.xpose.msra.mxu0 %v593_v27  ;;  %1164 = vmatprep.mubr.msk.bf16.mxu0 %vm1386_vm1, %v1385_v4 }
 0x172   : > { %1174 = vmatprep.subr.bf16.mxu0 %v1385_v4 }
 0x178   : > { %1165 = vmatmul.mubr.msk.bf16.vlgmr.msra.gmra.mrb[4].mxu0 %vm274_vm0, %v586_v29 }
 0x179   : > { %1175 = vmatpush3.bf16.xpose.msra.mxu0 %v705_v30  ;;  %1176 = vmatprep.mubr.msk.bf16.mxu0 %vm1386_vm1, %v1385_v4 }
 0x17a   : > { %1186 = vmatprep.subr.bf16.mxu0 %v1385_v4 }
 0x180   : > { %1177 = vmatmul.mubr.msk.bf16.vlgmr.msra.gmra.mrb[8].mxu0 %vm274_vm0, %v698_v31 }
 0x181   : > { %1202 = vmatprep.mubr.msk.bf16.mxu0 %vm1386_vm1, %v1385_v4 }
 0x1d1   : > { %v402_v32 = vpop.f32.mrb[8].mxu1 }
 0x1d2   : > { %v408_v33 = vmul.f32 0.17677669, %v402_v32  ;;  %v1142_v34 = vpop.f32.mrb[9].mxu1 }
 0x1d3   : > { %v405_v35 = vpop.f32.mrb[10].mxu1 }
 0x1d4   : > { %v1143_v36 = vpop.f32.mrb[11].mxu1  ;;  %v410_v37 = vsel %vm409_vm3, %v408_v33, -inf }
 0x1d5   : > { %411 = vmax.xlane.f32.xlu0 %v410_v37 }
 0x243   : > { %v516_v38 = vpop.f32.mrb[0].mxu0 }
 0x244   : > { %v522_v39 = vmul.f32 0.17677669, %v516_v38  ;;  %v1154_v40 = vpop.f32.mrb[1].mxu0 }
 0x245   : > { %v519_v41 = vpop.f32.mrb[2].mxu0 }
 0x246   : > { %v1155_v42 = vpop.f32.mrb[3].mxu0  ;;  %v523_v43 = vsel %vm409_vm3, %v522_v39, -inf }
 0x247   : > { %524 = vmax.xlane.f32.xlu1 %v523_v43  ;;  %v1264_v43 = vld [vmem:[%s1693_s2] sm:$0xff]  }
 0x248   : > { %1187 = vmatpush3.bf16.msra.mxu0 %v1264_v43 }
 0x249   : > { %1188 = vmatprep.subr.bf16.mxu0 %v1385_v4 }
 0x24b   : > { %v629_v44 = vpop.f32.mrb[4].mxu0 }
 0x24c   : > { %v635_v45 = vmul.f32 0.17677669, %v629_v44  ;;  %v1166_v46 = vpop.f32.mrb[5].mxu0  ;;  %v1265_v44 = vld [vmem:[%s1693_s2 + $0x8] sm:$0xff]  }
 0x24d   : > { %v632_v47 = vpop.f32.mrb[6].mxu0  ;;  %1189 = vmatpush3.bf16.msra.mxu0 %v1265_v44  ;;  %v1267_v46 = vld [vmem:[%s1693_s2 + $0x18] sm:$0xff]  }
 0x24e   : > { %v1167_v48 = vpop.f32.mrb[7].mxu0  ;;  %v636_v49 = vsel %vm409_vm3, %v635_v45, -inf  ;;  %1190 = vmatprep.subr.bf16.mxu0 %v1385_v4  ;;  %v1268_v47 = vld [vmem:[%s1693_s2 + $0x20] sm:$0xff]  }
 0x24f   : > { %637 = vmax.xlane.f32.xlu0 %v636_v49  ;;  %v1269_v48 = vld [vmem:[%s1693_s2 + $0x28] sm:$0xff]   ;;  %v1270_v49 = vld [vmem:[%s1693_s2 + $0x30] sm:$0xff]  }
 0x253   : > { %v741_v50 = vpop.f32.mrb[8].mxu0 }
 0x254   : > { %v747_v51 = vmul.f32 0.17677669, %v741_v50  ;;  %v1178_v52 = vpop.f32.mrb[9].mxu0 }
 0x255   : > { %v744_v53 = vpop.f32.mrb[10].mxu0 }
 0x256   : > { %v1179_v54 = vpop.f32.mrb[11].mxu0  ;;  %v748_v55 = vsel %vm409_vm3, %v747_v51, -inf }
 0x257   : > { %749 = vmax.xlane.f32.xlu0 %v748_v55  ;;  %v1271_v54 = vld [vmem:[%s1693_s2 + $0x38] sm:$0xff]  }
 0x262   : > { %v412_v56 = vpop.xlane.xlu0 %411 }
 0x263   : > { %v413_v57 = vsub.f32 %v408_v33, %v412_v56 }
 0x265   : > { %v414_v58 = vmul.f32 1.442695, %v413_v57 }
 0x267   : > { %1272 = vpow2.f32 %v414_v58 }
 0x271   : > { %v1273_v59 = vpop.eup %1272 }
 0x272   : > { %v416_v60 = vsel %vm409_vm3, %v1273_v59, 0.0 }
 0x273   : > { %417 = vadd.xlane.f32.xlu1 %v416_v60 }
 0x284   : > { %536 = vrot.lane.b32.xlu1 %v1516_v21, %s1388_s7 }
 0x2d4   : > { %v525_v61 = vpop.xlane.xlu1 %524 }
 0x2d5   : > { %v526_v62 = vsub.f32 %v522_v39, %v525_v61 }
 0x2d7   : > { %v527_v63 = vmul.f32 1.442695, %v526_v62 }
 0x2d9   : > { %1274 = vpow2.f32 %v527_v63 }
 0x2dc   : > { %v638_v0 = vpop.xlane.xlu0 %637 }
 0x2dd   : > { %v639_v1 = vsub.f32 %v635_v45, %v638_v0  ;;  %v1266_v45 = vld [vmem:[%s1693_s2 + $0x10] sm:$0xff]  }
 0x2de   : > { %1191 = vmatpush3.bf16.msra.mxu0 %v1266_v45 }
 0x2df   : > { %v640_v2 = vmul.f32 1.442695, %v639_v1  ;;  %1192 = vmatprep.subr.bf16.mxu0 %v1385_v4 }
 0x2e1   : > { %1276 = vpow2.f32 %v640_v2 }
 0x2e2   : > { %1193 = vmatpush3.bf16.msra.mxu0 %v1267_v46 }
 0x2e3   : > { %v1275_v3 = vpop.eup %1274  ;;  %1194 = vmatprep.subr.bf16.mxu0 %v1385_v4 }
 0x2e4   : > { %v750_v5 = vpop.xlane.xlu0 %749  ;;  %v529_v6 = vsel %vm409_vm3, %v1275_v3, 0.0 }
 0x2e5   : > { %v751_v7 = vsub.f32 %v747_v51, %v750_v5  ;;  %530 = vadd.xlane.f32.xlu0 %v529_v6 }
 0x2e6   : > { %1195 = vmatpush3.bf16.msra.mxu0 %v1268_v47 }
 0x2e7   : > { %v752_v8 = vmul.f32 1.442695, %v751_v7  ;;  %1196 = vmatprep.subr.bf16.mxu0 %v1385_v4 }
 0x2e9   : > { %1278 = vpow2.f32 %v752_v8 }
 0x2ea   : > { %1197 = vmatpush3.bf16.msra.mxu0 %v1269_v48 }
 0x2eb   : > { %v1277_v9 = vpop.eup %1276  ;;  %1198 = vmatprep.subr.bf16.mxu0 %v1385_v4 }
 0x2ec   : > { %v642_v10 = vsel %vm409_vm3, %v1277_v9, 0.0 }
 0x2ed   : > { %643 = vadd.xlane.f32.xlu1 %v642_v10 }
 0x2ee   : > { %1199 = vmatpush3.bf16.msra.mxu0 %v1270_v49 }
 0x2ef   : > { %1200 = vmatprep.subr.bf16.mxu0 %v1385_v4 }
 0x2f2   : > { %1201 = vmatpush3.bf16.msra.mxu0 %v1271_v54 }
 0x2f3   : > { %v1279_v11 = vpop.eup %1278 }
 0x2f4   : > { %v754_v12 = vsel %vm409_vm3, %v1279_v11, 0.0 }
 0x2f5   : > { %755 = vadd.xlane.f32.xlu0 %v754_v12 }
 0x2fe   : > { %760 = vrot.lane.b32.xlu1 %v1516_v21, %s1389_s8 }
 0x300   : > { %v418_v13 = vpop.xlane.xlu1 %417 }
 0x301   : > { %1280 = vrcp.f32 %v418_v13 }
 0x304   : > { %v537_v16 = vpop.permute.xlu1 %536 }
 0x305   : > { %v542_v18 = vsel %vm425_vm2, %v537_v16, 0 }
 0x30b   : > { %v1281_v14 = vpop.eup %1280  ;;  %648 = vrot.lane.b32.xlu0 %v1516_v21, %s1387_s6 }
 0x30c   : > { %v420_v15 = vmul.f32 %v1281_v14, %v1273_v59 }
 0x30e   : > { %v421_v17 = vpack.c.bf16 %v420_v15, %v420_v15 }
 0x310   : > { %1147 = vmatmul.mubr.msk.bf16.vlgmr.msra.gmra.mrb[12].mxu1 %vm409_vm3, %v421_v17 }
 0x311   : > { %1157 = vmatpush3.bf16.msra.mxu1 %v542_v18  ;;  %1158 = vmatprep.mubr.msk.bf16.mxu1 %vm1386_vm1, %v1385_v4 }
 0x312   : > { %1168 = vmatprep.subr.bf16.mxu1 %v1385_v4 }
 0x372   : > { %v531_v19 = vpop.xlane.xlu0 %530 }
 0x373   : > { %1282 = vrcp.f32 %v531_v19 }
 0x37a   : > { %v644_v20 = vpop.xlane.xlu1 %643 }
 0x37b   : > { %1284 = vrcp.f32 %v644_v20 }
 0x37d   : > { %v1283_v22 = vpop.eup %1282 }
 0x37e   : > { %v533_v23 = vmul.f32 %v1283_v22, %v1275_v3  ;;  %v761_v29 = vpop.permute.xlu1 %760 }
 0x37f   : > { %v766_v31 = vsel %vm425_vm2, %v761_v29, 0 }
 0x380   : > { %v534_v21 = vpack.c.bf16 %v533_v23, %v533_v23  ;;  %v584_v32 = vadd.f32 %v533_v23, %v420_v15 }
 0x382   : > { %1159 = vmatmul.mubr.msk.bf16.vlgmr.msra.gmra.mrb[16].mxu1 %vm409_vm3, %v534_v21  ;;  %v756_v24 = vpop.xlane.xlu0 %755 }
 0x383   : > { %1286 = vrcp.f32 %v756_v24  ;;  %1170 = vmatprep.mubr.msk.bf16.mxu1 %vm1386_vm1, %v1385_v4 }
 0x385   : > { %v1285_v25 = vpop.eup %1284 }
 0x386   : > { %v646_v26 = vmul.f32 %v1285_v25, %v1277_v9  ;;  %v649_v27 = vpop.permute.xlu0 %648 }
 0x387   : > { %v654_v28 = vsel %vm425_vm2, %v649_v27, 0 }
 0x388   : > { %1169 = vmatpush3.bf16.msra.mxu1 %v654_v28  ;;  %v647_v30 = vpack.c.bf16 %v646_v26, %v646_v26  ;;  %v696_v35 = vadd.f32 %v646_v26, %v584_v32 }
 0x389   : > { %1180 = vmatprep.subr.bf16.mxu1 %v1385_v4 }
 0x38b   : > { %1171 = vmatmul.mubr.msk.bf16.vlgmr.msra.gmra.mrb[20].mxu1 %vm409_vm3, %v647_v30 }
 0x38c   : > { %1181 = vmatpush3.bf16.msra.mxu1 %v766_v31  ;;  %1182 = vmatprep.mubr.msk.bf16.mxu1 %vm1386_vm1, %v1385_v4 }
 0x38d   : > { %v1287_v33 = vpop.eup %1286 }
 0x38e   : > { %v758_v34 = vmul.f32 %v1287_v33, %v1279_v11 }
 0x390   : > { %v759_v36 = vpack.c.bf16 %v758_v34, %v758_v34  ;;  %v808_v37 = vadd.f32 %v758_v34, %v696_v35 }
 0x392   : > { %v939_v38 = vmul.f32 0.25, %v808_v37 }
 0x393   : > { %1183 = vmatmul.mubr.msk.bf16.vlgmr.msra.gmra.mrb[24].mxu1 %vm409_vm3, %v759_v36 }
 0x394   : > { %940 = vst.msk [vmem:[%s1571_s11] sm:$0xff] %vm409_vm3, %v939_v38 }
 0x3e3   : > { %v463_v39 = vpop.f32.mrb[12].mxu1 }
 0x3e4   : > { %v1148_v40 = vpop.f32.mrb[13].mxu1 }
 0x3e5   : > { %v466_v41 = vpop.f32.mrb[14].mxu1 }
 0x3e6   : > { %v1149_v42 = vpop.f32.mrb[15].mxu1 }
 0x455   : > { %v578_v50 = vpop.f32.mrb[16].mxu1 }
 0x456   : > { %810 = vrot.lane.b32.xlu1 %v578_v50, %s1389_s8  ;;  %v1160_v51 = vpop.f32.mrb[17].mxu1 }
 0x457   : > { %v581_v52 = vpop.f32.mrb[18].mxu1 }
 0x458   : > { %v1161_v53 = vpop.f32.mrb[19].mxu1 }
 0x45e   : > { %v690_v55 = vpop.f32.mrb[20].mxu1 }
 0x45f   : > { %814 = vrot.lane.b32.xlu0 %v690_v55, %s1387_s6  ;;  %v1172_v56 = vpop.f32.mrb[21].mxu1  ;;  %s1098_s6 = sshll.u32 %s1443_s22, 7 }
 0x460   : > { %v693_v57 = vpop.f32.mrb[22].mxu1  ;;  %s1616_s23 = scalar_lea.hbm %s1696_s5, %s1098_s6 }
 0x461   : > { %v1173_v58 = vpop.f32.mrb[23].mxu1 }
 0x466   : > { %v802_v59 = vpop.f32.mrb[24].mxu1 }
 0x467   : > { %818 = vrot.lane.b32.xlu1 %v802_v59, %s1388_s7  ;;  %v1184_v60 = vpop.f32.mrb[25].mxu1 }
 0x468   : > { %v805_v61 = vpop.f32.mrb[26].mxu1 }
 0x469   : > { %v1185_v4 = vpop.f32.mrb[27].mxu1 }
 0x4c8   : > { %v811_v62 = vpop.permute.xlu1 %810 }
 0x4c9   : > { %v821_v0 = vsel %vm274_vm0, %v463_v39, %v811_v62 }
 0x4d1   : > { %v815_v63 = vpop.permute.xlu0 %814 }
 0x4d2   : > { %v823_v1 = vsel %vm822_vm4, %v821_v0, %v815_v63 }
 0x4d9   : > { %v819_v2 = vpop.permute.xlu1 %818 }
 0x4da   : > { %v825_v3 = vsel %vm824_vm5, %v823_v1, %v819_v2 }
 0x4db   : > { %v826_v5 = vpack.c.bf16 %v825_v3, %v825_v3 }
 0x4dd   : > { %1203 = vmatmul.mubr.bf16.vlgmr.msra.gmra.mrb[12].mxu0 %v826_v5 }
 0x4de   : > { %1301 = shalt.err (!%p1298_p3)
}
 0x4df   : > { %s1302_s11 = scalar_lea.hbm %s1616_s23, 128  ;;  %s1306_s17 = scalar_lea.hbm %s1696_s5, 256 }
 0x4e0   : > { %p1303_p4 = scmp.ne.s32.totalorder %s1616_s23, %s1302_s11  ;;  %p1307_p9 = scmp.lt.u32.totalorder %s1616_s23, %s1696_s5 }
 0x4e1   : > { %p1308_p10 = scmp.lt.u32.totalorder %s1306_s17, %s1302_s11  ;;  %p1310_p12 = scmp.lt.u32.totalorder %s1302_s11, %s1616_s23 }
 0x4e2   : > { %p1304_p7 = pnand %p1303_p4, %p1460_p5 }
 0x4e3   : > { %p1309_p11 = por %p1308_p10, %p1307_p9 }
 0x4e4   : > { %p1305_p8 = pneg %p1304_p7 }
 0x4e5   : > { %p1311_p13 = por %p1310_p12, %p1309_p11 }
 0x4e7   : > { %p1312_p0 = pnand %p1311_p13, %p1305_p8 }
 0x4e9   : > { %1315 = shalt.err (!%p1312_p0)
}
 0x4ea   : > { %1207 = dma.vmem_to_hbm [thread:$0]  (%p1460_p5), %s974_s25, 128, %s1616_s23, %s947_s26   ;;  %v1087_v6 = vld [vmem:[%s1694_s3] ss:$0 sm:$0xff] }
 0x4eb   : > { %s219_s13 = scalar_lea.vmem [#allocation2], %s1068_s10  ;;  %s1647_s16 = scalar_lea.hbm %s1695_s4, %s1098_s6 }
 0x4ec   : > { %s960_s14 = sshll.u32 %s219_s13, 4  ;;  %s942_s10 = scalar_lea.sflag [#allocation3], %s1563_s9  ;;  %s1649_s14 = int_to_ptr.vmem [resolvable:$true] %s960_s14 }
 0x4ed   : > { %s1316_s23 = scalar_lea.vmem %s1649_s14, 128  ;;  %s1391_s22 = smov [#allocation2]  }
 0x4ee   : > { %p1317_p1 = scmp.ne.s32.totalorder %s1649_s14, %s1316_s23  ;;  %s1320_s25 = sshll.u32 %s1391_s22, 4  ;;  %s1321_s25 = int_to_ptr.vmem [resolvable:$false] %s1320_s25 }
 0x4ef   : > { %s1322_s6 = scalar_lea.vmem %s1321_s25, 256  ;;  %p1323_p4 = scmp.lt.s32.totalorder %s1649_s14, %s1321_s25 }
 0x4f0   : > { %p1318_p2 = pnand %p1317_p1, %p1460_p5  ;;  %p1324_p7 = scmp.lt.s32.totalorder %s1322_s6, %s1316_s23 }
 0x4f2   : > { %p1319_p3 = pneg %p1318_p2  ;;  %p1325_p8 = por %p1324_p7, %p1323_p4 }
 0x4f4   : > { %p1326_p9 = pnand %p1325_p8, %p1319_p3 }
 0x5b0   : > { %v932_v7 = vpop.f32.mrb[12].mxu0 }
 0x5b1   : > { %v933_v8 = vadd.f32 %v1087_v6, %v932_v7  ;;  %v1204_v9 = vpop.f32.mrb[13].mxu0 }
 0x5b2   : > { %v935_v10 = vpop.f32.mrb[14].mxu0 }
 0x5b3   : > { %v1205_v11 = vpop.f32.mrb[15].mxu0  ;;  %938 = vst.msk [vmem:[%s219_s13] sm:$0xff] %vm274_vm0, %v933_v8 }
 0x5b4   : > { %1329 = shalt.err (!%p1326_p9)
}
 0x5b5   : > { %s1330_s9 = scalar_lea.hbm %s1647_s16, 128  ;;  %s1334_s7 = scalar_lea.hbm %s1695_s4, 256 }
 0x5b6   : > { %p1331_p10 = scmp.ne.s32.totalorder %s1647_s16, %s1330_s9  ;;  %p1335_p13 = scmp.lt.u32.totalorder %s1647_s16, %s1695_s4 }
 0x5b7   : > { %p1336_p0 = scmp.lt.u32.totalorder %s1334_s7, %s1330_s9  ;;  %p1338_p2 = scmp.lt.u32.totalorder %s1330_s9, %s1647_s16 }
 0x5b8   : > { %p1332_p11 = pnand %p1331_p10, %p1460_p5 }
 0x5b9   : > { %p1337_p1 = por %p1336_p0, %p1335_p13 }
 0x5ba   : > { %p1333_p12 = pneg %p1332_p11 }
 0x5bb   : > { %p1339_p3 = por %p1338_p2, %p1337_p1 }
 0x5bd   : > { %p1340_p4 = pnand %p1339_p3, %p1333_p12 }
 0x5bf   : > { %1343 = shalt.err (!%p1340_p4)
}
 0x5c0   : > { %1206 = dma.vmem_to_hbm [thread:$0]  (%p1460_p5), %s1649_s14, 128, %s1647_s16, %s942_s10  }
 0x5c1 PF: > { %p1217_p7 = scmp.ge.s32.totalorder %s1382_s21, 2  ;;  %s985_s12 = sand.u32 1, %s1370_s18  }
 0x5c2   : > { %s986_s13 = scalar_lea.sflag [#allocation3], %s985_s12 }
 0x5c3   : > { %p1211_p8 = pnand %p1217_p7, %p1464_p6 }
 0x5c5   : > { %1361 = dma.done.wait (!%p1211_p8), %s986_s13, 128  }
 0x5c6   : > { %1363 = vsyncadd (!%p1211_p8), %s986_s13, 4294967168  ;;  %s995_s11 = scalar_lea.sflag [#allocation5], %s985_s12 }
 0x5c7   : > { %1365 = dma.done.wait (!%p1211_p8), %s995_s11, 128  }
 0x5c8   : > { %1367 = vsyncadd (!%p1211_p8), %s995_s11, 4294967168  ;;  %p19_p5 = scmp.ge.s32.totalorder %s1447_s24, 4   ;;  %s1699_s18 = smov %s1374_s19 }
 0x5c9   : > { %s1700_s19 = smov %s1378_s20  ;;  %s1701_s20 = smov %s1458_s27 }
 0x5ca   : > { %s1702_s21 = smov %s1447_s24  ;;  %21 = sbr.rel (!%p19_p5) target bundleno = 5 (0x5), region = 88 }
 0x5d1   :  { %1000 = vsyncpa [#allocation3], 1 }
 0x5d2   :  { %1002 = vsyncpa [#allocation3 + $0x1], 1 }
 0x5d3   :  { %1003 = vsyncpa [#allocation5], 1 }
 0x5d4   :  { %1005 = vsyncpa [#allocation5 + $0x1], 1 }

</bundles_post_ra>
